<compile_context>
chip_gen: v5e
topology: v5e:2x2
jax: 0.10.0
libtpu: 0.0.40
codegen_flags: <defaults>
</compile_context>

<pallas_src>
from typing import NamedTuple

import jax
import jax.numpy as jnp
from jax.experimental import pallas as pl
from jax.experimental.pallas import tpu as pltpu

_LANE = 128            # lane width (last-dim tile)
_SUBLANE_BF16 = 16     # bf16 sublane packing for the batch (second-to-last) dim

# Safe on every chip: above the 16/32 MiB scoped defaults, below v7x 64 MiB/TC.
_VMEM_LIMIT_BYTES = 48 * (1 << 20)
_RESIDENT_BUDGET_BYTES = 40 * (1 << 20)


def _round_up(x, m):
    return ((x + m - 1) // m) * m


def _single_buffered_kwargs():
    """Single-buffer constant-index blocks (never re-DMA'd) to halve their VMEM."""
    try:
        kwargs = {"pipeline_mode": pl.Buffered(1)}
        pl.BlockSpec((8, 128), lambda i: (0, 0), **kwargs)   # validate support
        return kwargs
    except Exception:          # pragma: no cover - fall back to default buffering
        return {}


def _largest_divisor_tile(total, cap, step):
    """Largest multiple of `step` <= cap that divides `total` (total % step == 0)."""
    best = step
    for cand in range(step, min(cap, total) + 1, step):
        if total % cand == 0:
            best = cand
    return best


class MLPParams(NamedTuple):
    w1: jax.Array     # [Kp, Hp] bf16 (padded; transposed vs torch nn.Linear.weight)
    b1: jax.Array     # [1, Hp]  f32
    w2: jax.Array     # [Hp, Np] bf16
    b2: jax.Array     # [1, Np]  f32
    in_dim: int
    hidden_dim: int
    out_dim: int


def prepare_params(w1, b1, w2, b2) -> MLPParams:
    """Pad feature dims to the 128-lane tile and cast to MXU dtypes ONCE.

    w1: [input_dim, hidden_dim], w2: [hidden_dim, output_dim]  (transposed vs torch).
    Zero padding is exact: padded rows/cols contribute 0 and padded outputs are 0.
    """
    K, H = w1.shape
    N = w2.shape[1]
    Kp, Hp, Np = (_round_up(d, _LANE) for d in (K, H, N))
    w1p = jnp.zeros((Kp, Hp), jnp.bfloat16).at[:K, :H].set(w1.astype(jnp.bfloat16))
    b1p = jnp.zeros((1, Hp), jnp.float32).at[0, :H].set(b1.astype(jnp.float32))
    w2p = jnp.zeros((Hp, Np), jnp.bfloat16).at[:H, :N].set(w2.astype(jnp.bfloat16))
    b2p = jnp.zeros((1, Np), jnp.float32).at[0, :N].set(b2.astype(jnp.float32))
    return MLPParams(w1p, b1p, w2p, b2p, K, H, N)


# --------------------------- kernels ---------------------------------------

def _mlp_resident_kernel(x_ref, w1_ref, b1_ref, w2_ref, b2_ref, o_ref):
    # Fused fc1 -> ReLU -> fc2 for one batch tile; weights are VMEM-resident.
    h = jnp.dot(x_ref[...], w1_ref[...], preferred_element_type=jnp.float32)
    h = jnp.maximum(h + b1_ref[...], 0.0)            # bias + ReLU in f32
    h = h.astype(jnp.bfloat16)                        # cast only at the MXU boundary
    y = jnp.dot(h, w2_ref[...], preferred_element_type=jnp.float32)
    o_ref[...] = (y + b2_ref[...]).astype(o_ref.dtype)


def _mlp_hchunk_kernel(x_ref, w1_ref, b1_ref, w2_ref, b2_ref, o_ref, acc_ref):
    # Hidden dim streamed in chunks: acc += relu(x@W1[:,j] + b1[j]) @ W2[j,:].
    j = pl.program_id(1)

    @pl.when(j == 0)
    def _():
        acc_ref[...] = jnp.zeros_like(acc_ref)

    h = jnp.dot(x_ref[...], w1_ref[...], preferred_element_type=jnp.float32)
    h = jnp.maximum(h + b1_ref[...], 0.0).astype(jnp.bfloat16)
    acc_ref[...] += jnp.dot(h, w2_ref[...], preferred_element_type=jnp.float32)

    @pl.when(j == pl.num_programs(1) - 1)
    def _():
        o_ref[...] = (acc_ref[...] + b2_ref[...]).astype(o_ref.dtype)


# --------------------------- tiling choices --------------------------------

def _choose_batch_tiling(B, batch_tile):
    """Pick (TB, Bp): TB a multiple of 16, minimal padding, >=2 grid steps when possible."""
    batch_tile = max(_SUBLANE_BF16, _round_up(int(batch_tile), _SUBLANE_BF16))
    Bp16 = _round_up(max(B, 1), _SUBLANE_BF16)
    cap = min(batch_tile, Bp16)
    if Bp16 >= 2 * _SUBLANE_BF16:
        # Leave at least two tiles so dimension_semantics=("parallel",) gives
        # both v7x TensorCores work.
        cap = min(cap, max(_SUBLANE_BF16, (Bp16 // 2) // _SUBLANE_BF16 * _SUBLANE_BF16))
    tb = _largest_divisor_tile(Bp16, cap, _SUBLANE_BF16)
    # If divisibility forces tiny tiles, accept <=1 tile of pad rows instead.
    if tb * 4 < cap:
        tb = cap
    return tb, _round_up(B, tb)


def _choose_hidden_chunk(Kp, Hp, Np, TB):
    """Largest hidden chunk whose streamed (double-buffered) footprint fits the budget."""
    fixed = (Np * 4                      # resident b2
             + 2 * TB * Kp * 2           # x tiles (double buffered)
             + 2 * TB * Np * 4           # out tiles (double buffered)
             + TB * Np * 4)              # f32 accumulator scratch
    per_th = 4 * Kp + 4 * Np + 8 + 4 * TB   # w1/w2/b1 chunks (x2 buffers) + live h tile
    th = (_RESIDENT_BUDGET_BYTES - fixed) // per_th
    th = max(_LANE, (th // _LANE) * _LANE)
    return min(th, Hp)


# --------------------------- forward ---------------------------------------

def mlp_forward(x, params: MLPParams, *, batch_tile=512, hidden_chunk=None,
                out_dtype=jnp.float32):
    """Forward pass of FullyConnectedClassifier: relu(x @ W1 + b1) @ W2 + b2."""
    K, H, N = params.in_dim, params.hidden_dim, params.out_dim
    Kp, Hp = params.w1.shape
    Np = params.w2.shape[1]
    B = x.shape[0]
    assert x.shape[1] == K, "x feature dim does not match the prepared params"

    TB, Bp = _choose_batch_tiling(B, batch_tile)

    # Pad/cast activations only when needed (skip the extra HBM round-trip).
    if x.dtype == jnp.bfloat16 and x.shape == (Bp, Kp):
        xp = x
    else:
        xp = jnp.zeros((Bp, Kp), jnp.bfloat16).at[:B, :K].set(x.astype(jnp.bfloat16))

    out_bytes = Bp * Np * jnp.dtype(out_dtype).itemsize
    cost = pl.CostEstimate(
        flops=2 * Bp * Kp * Hp + 2 * Bp * Hp * Np,
        transcendentals=0,
        bytes_accessed=(Bp * Kp * 2 + Kp * Hp * 2 + Hp * Np * 2
                        + Hp * 4 + Np * 4 + out_bytes),
    )

    # Resident footprint: single-buffered weights + double-buffered x/out tiles
    # + live (TB, Hp) f32 hidden activation.
    resident_bytes = (Kp * Hp * 2 + Hp * Np * 2 + Hp * 4 + Np * 4
                      + 2 * TB * Kp * 2 + 2 * TB * Np * 4 + TB * Hp * 4)

    single = _single_buffered_kwargs()

    if hidden_chunk is None and resident_bytes <= _RESIDENT_BUDGET_BYTES:
        # ---- Fused, weight-resident path (small/medium layers) ----
        out = pl.pallas_call(
            _mlp_resident_kernel,
            out_shape=jax.ShapeDtypeStruct((Bp, Np), out_dtype),
            grid=(Bp // TB,),
            in_specs=[
                pl.BlockSpec((TB, Kp), lambda i: (i, 0)),              # x: batch-tiled
                pl.BlockSpec((Kp, Hp), lambda i: (0, 0), **single),    # w1: resident
                pl.BlockSpec((1, Hp), lambda i: (0, 0), **single),     # b1: resident
                pl.BlockSpec((Hp, Np), lambda i: (0, 0), **single),    # w2: resident
                pl.BlockSpec((1, Np), lambda i: (0, 0), **single),     # b2: resident
            ],
            out_specs=pl.BlockSpec((TB, Np), lambda i: (i, 0)),
            compiler_params=pltpu.CompilerParams(
                dimension_semantics=("parallel",),                     # megacore shard
                vmem_limit_bytes=_VMEM_LIMIT_BYTES),
            cost_estimate=cost,
        )(xp, params.w1, params.b1, params.w2, params.b2)
    else:
        # ---- Hidden-dim streamed path (large layers / v7x 64 MiB VMEM) ----
        if hidden_chunk is not None:
            th_cap = max(_LANE, _round_up(min(int(hidden_chunk), Hp), _LANE))
        else:
            th_cap = _choose_hidden_chunk(Kp, Hp, Np, TB)
        TH = _largest_divisor_tile(Hp, th_cap, _LANE)

        out = pl.pallas_call(
            _mlp_hchunk_kernel,
            out_shape=jax.ShapeDtypeStruct((Bp, Np), out_dtype),
            grid=(Bp // TB, Hp // TH),
            in_specs=[
                pl.BlockSpec((TB, Kp), lambda i, j: (i, 0)),           # x: batch-tiled
                pl.BlockSpec((Kp, TH), lambda i, j: (0, j)),           # w1 column chunk
                pl.BlockSpec((1, TH), lambda i, j: (0, j)),            # b1 chunk
                pl.BlockSpec((TH, Np), lambda i, j: (j, 0)),           # w2 row chunk
                pl.BlockSpec((1, Np), lambda i, j: (0, 0), **single),  # b2: resident
            ],
            out_specs=pl.BlockSpec((TB, Np), lambda i, j: (i, 0)),
            scratch_shapes=[pltpu.VMEM((TB, Np), jnp.float32)],
            compiler_params=pltpu.CompilerParams(
                dimension_semantics=("parallel", "arbitrary"),
                vmem_limit_bytes=_VMEM_LIMIT_BYTES),
            cost_estimate=cost,
        )(xp, params.w1, params.b1, params.w2, params.b2)

    # Padded batch rows contain relu(b1)@W2+b2 garbage; this slice removes them.
    return out[:B, :N]


def fully_connected_classifier(x, w1, b1, w2, b2, **kwargs):
    """Convenience one-shot wrapper (prefer prepare_params + mlp_forward in loops)."""
    return mlp_forward(x, prepare_params(w1, b1, w2, b2), **kwargs)


def init_params(key, input_dim, hidden_dim, output_dim):
    """Deterministic init mimicking nn.Linear's uniform(-1/sqrt(fan_in), 1/sqrt(fan_in))."""
    k1, k2, k3, k4 = jax.random.split(key, 4)
    bound1 = 1.0 / jnp.sqrt(input_dim)
    bound2 = 1.0 / jnp.sqrt(hidden_dim)
    w1 = jax.random.uniform(k1, (input_dim, hidden_dim), jnp.float32, -bound1, bound1)
    b1 = jax.random.uniform(k2, (hidden_dim,), jnp.float32, -bound1, bound1)
    w2 = jax.random.uniform(k3, (hidden_dim, output_dim), jnp.float32, -bound2, bound2)
    b2 = jax.random.uniform(k4, (output_dim,), jnp.float32, -bound2, bound2)
    return w1, b1, w2, b2


if __name__ == "__main__":
    input_dim, hidden_dim, output_dim = 16, 32, 8
    batch = 4

    key = jax.random.PRNGKey(0)
    kx, kp, kp2 = jax.random.split(key, 3)
    x = jax.random.normal(kx, (batch, input_dim), jnp.float32)
    w1, b1, w2, b2 = init_params(kp, input_dim, hidden_dim, output_dim)

    # Pad/cast weights once (outside the per-call path), then run the kernel.
    params = prepare_params(w1, b1, w2, b2)
    out = jax.block_until_ready(mlp_forward(x, params))
    assert out.shape == (batch, output_dim)

    def ref_bf16(x, w1, b1, w2, b2):
        # Reference mimicking the kernel's bf16-operand / f32-accumulate numerics.
        xb = x.astype(jnp.bfloat16).astype(jnp.float32)
        w1b = w1.astype(jnp.bfloat16).astype(jnp.float32)
        w2b = w2.astype(jnp.bfloat16).astype(jnp.float32)
        h = jnp.maximum(xb @ w1b + b1, 0.0).astype(jnp.bfloat16).astype(jnp.float32)
        return h @ w2b + b2

    assert jnp.allclose(out, ref_bf16(x, w1, b1, w2, b2), atol=1e-3, rtol=1e-3)
    # Loose check vs the pure-f32 PyTorch forward (bf16 MXU operands are intentional).
    ref_f32 = jnp.maximum(x @ w1 + b1, 0.0) @ w2 + b2
    assert jnp.allclose(out, ref_f32, atol=5e-2, rtol=5e-2)

    # Also exercise the hidden-dim streamed (accumulator) path at small shapes:
    # hidden=160 pads to 256 -> two 128-wide hidden chunks on the reduction axis.
    h2 = 160
    w1c, b1c, w2c, b2c = init_params(kp2, input_dim, h2, output_dim)
    params_c = prepare_params(w1c, b1c, w2c, b2c)
    out_c = jax.block_until_ready(mlp_forward(x, params_c, hidden_chunk=128))
    assert out_c.shape == (batch, output_dim)
    assert jnp.allclose(out_c, ref_bf16(x, w1c, b1c, w2c, b2c), atol=2e-3, rtol=2e-3)

    print("KERNEL_OK")
</pallas_src>

<mosaic_0001>
module attributes {stable_mosaic.version = 11 : i64} {
  func.func @_mlp_resident_kernel(%arg0: i32, %arg1: memref<16x128xbf16, #tpu.memory_space<vmem>>, %arg2: memref<128x128xbf16, #tpu.memory_space<vmem>>, %arg3: memref<1x128xf32, #tpu.memory_space<vmem>>, %arg4: memref<128x128xbf16, #tpu.memory_space<vmem>>, %arg5: memref<1x128xf32, #tpu.memory_space<vmem>>, %arg6: memref<16x128xf32, #tpu.memory_space<vmem>>) attributes {dimension_semantics = [#tpu.dimension_semantics<parallel>], iteration_bounds = array<i64: 1>, scalar_prefetch = 0 : i64, scratch_operands = 0 : i64, tpu.core_type = #tpu.core_type<tc>, window_params = [{transform_indices = @transform_0, window_bounds = array<i64: 16, 128>}, {pipeline_mode = #tpu.pipeline_mode<synchronous>, transform_indices = @transform_1, window_bounds = array<i64: 128, 128>}, {pipeline_mode = #tpu.pipeline_mode<synchronous>, transform_indices = @transform_2, window_bounds = array<i64: 1, 128>}, {pipeline_mode = #tpu.pipeline_mode<synchronous>, transform_indices = @transform_3, window_bounds = array<i64: 128, 128>}, {pipeline_mode = #tpu.pipeline_mode<synchronous>, transform_indices = @transform_4, window_bounds = array<i64: 1, 128>}, {transform_indices = @transform_5, window_bounds = array<i64: 16, 128>}]} {
    %c0 = arith.constant 0 : index
    %c0_0 = arith.constant 0 : index
    %0 = vector.load %arg1[%c0, %c0_0] : memref<16x128xbf16, #tpu.memory_space<vmem>>, vector<16x128xbf16>
    %c0_1 = arith.constant 0 : index
    %c0_2 = arith.constant 0 : index
    %1 = vector.load %arg2[%c0_1, %c0_2] : memref<128x128xbf16, #tpu.memory_space<vmem>>, vector<128x128xbf16>
    %cst = arith.constant dense<0.000000e+00> : vector<16x128xf32>
    %2 = tpu.matmul %0, %1, %cst {dimension_numbers = #tpu.dot_dimension_numbers<[1], [0], [0], [1], [0, 0, 1, 1], [], []>} : vector<16x128xbf16>, vector<128x128xbf16>, vector<16x128xf32> -> vector<16x128xf32>
    %c0_3 = arith.constant 0 : index
    %c0_4 = arith.constant 0 : index
    %3 = vector.load %arg3[%c0_3, %c0_4] : memref<1x128xf32, #tpu.memory_space<vmem>>, vector<1x128xf32>
    %4 = vector.broadcast %3 : vector<1x128xf32> to vector<16x128xf32>
    %5 = arith.addf %2, %4 : vector<16x128xf32>
    %cst_5 = arith.constant 0.000000e+00 : f32
    %6 = vector.broadcast %cst_5 : f32 to vector<16x128xf32>
    %7 = arith.maximumf %5, %6 : vector<16x128xf32>
    %8 = arith.truncf %7 : vector<16x128xf32> to vector<16x128xbf16>
    %c0_6 = arith.constant 0 : index
    %c0_7 = arith.constant 0 : index
    %9 = vector.load %arg4[%c0_6, %c0_7] : memref<128x128xbf16, #tpu.memory_space<vmem>>, vector<128x128xbf16>
    %cst_8 = arith.constant dense<0.000000e+00> : vector<16x128xf32>
    %10 = tpu.matmul %8, %9, %cst_8 {dimension_numbers = #tpu.dot_dimension_numbers<[1], [0], [0], [1], [0, 0, 1, 1], [], []>} : vector<16x128xbf16>, vector<128x128xbf16>, vector<16x128xf32> -> vector<16x128xf32>
    %c0_9 = arith.constant 0 : index
    %c0_10 = arith.constant 0 : index
    %11 = vector.load %arg5[%c0_9, %c0_10] : memref<1x128xf32, #tpu.memory_space<vmem>>, vector<1x128xf32>
    %12 = vector.broadcast %11 : vector<1x128xf32> to vector<16x128xf32>
    %13 = arith.addf %10, %12 : vector<16x128xf32>
    %c0_11 = arith.constant 0 : index
    %c0_12 = arith.constant 0 : index
    %14 = vector.load %arg6[%c0_11, %c0_12] : memref<16x128xf32, #tpu.memory_space<vmem>>, vector<16x128xf32>
    tpu.vector_store %arg6[%c0_11, %c0_12], %13 {strides = array<i32>} : memref<16x128xf32, #tpu.memory_space<vmem>>, vector<16x128xf32>,
    return
  }
  func.func @transform_0(%arg0: i32) -> (i32, i32) {
    %c0_i32 = arith.constant 0 : i32
    %c0_i32_0 = arith.constant 0 : i32
    return %arg0, %c0_i32 : i32, i32
  }
  func.func @transform_1(%arg0: i32) -> (i32, i32) {
    %c0_i32 = arith.constant 0 : i32
    %c0_i32_0 = arith.constant 0 : i32
    %c0_i32_1 = arith.constant 0 : i32
    return %c0_i32, %c0_i32_0 : i32, i32
  }
  func.func @transform_2(%arg0: i32) -> (i32, i32) {
    %c0_i32 = arith.constant 0 : i32
    %c0_i32_0 = arith.constant 0 : i32
    %c0_i32_1 = arith.constant 0 : i32
    return %c0_i32, %c0_i32_0 : i32, i32
  }
  func.func @transform_3(%arg0: i32) -> (i32, i32) {
    %c0_i32 = arith.constant 0 : i32
    %c0_i32_0 = arith.constant 0 : i32
    %c0_i32_1 = arith.constant 0 : i32
    return %c0_i32, %c0_i32_0 : i32, i32
  }
  func.func @transform_4(%arg0: i32) -> (i32, i32) {
    %c0_i32 = arith.constant 0 : i32
    %c0_i32_0 = arith.constant 0 : i32
    %c0_i32_1 = arith.constant 0 : i32
    return %c0_i32, %c0_i32_0 : i32, i32
  }
  func.func @transform_5(%arg0: i32) -> (i32, i32) {
    %c0_i32 = arith.constant 0 : i32
    %c0_i32_0 = arith.constant 0 : i32
    return %arg0, %c0_i32 : i32, i32
  }
}

</mosaic_0001>

<bundles_post_ra>
// kernel: tpu_custom_call.1
= control target key start
LH: loop header
LB: loop body
LE: loop exit
PB: predicated region body
PF: predicated region fallthrough
CT: control target
= control target key end

     0   :  { %10 = vsyncpa [#allocation3], 0  ;;  %s518_s0 = inlined_call_operand.hbm [shape: bf16[16,128], index: 0, kind: input, shape index: {}]   ;;  %s519_s1 = inlined_call_operand.hbm [shape: bf16[128,128], index: 1, kind: input, shape index: {}]   ;;  %s520_s2 = inlined_call_operand.vmem [shape: f32[1,128], index: 2, kind: input, shape index: {}]   ;;  %s521_s3 = inlined_call_operand.hbm [shape: bf16[128,128], index: 3, kind: input, shape index: {}]   ;;  %s522_s4 = inlined_call_operand.vmem [shape: f32[1,128], index: 4, kind: input, shape index: {}]   ;;  %s523_s5 = inlined_call_operand.hbm [shape: f32[16,128], index: 5, kind: output, shape index: {}]  }
   0x1   :  { %11 = vsyncpa [#allocation6], 0 }
   0x2   :  { %12 = vsyncpa [#allocation4], 0  ;;  %s30_s20 = sshll.u32 %s519_s1, 4  ;;  %s462_s21 = smov [#allocation5]   ;;  %s31_s20 = int_to_ptr.hbm [resolvable:$true] %s30_s20 }
   0x3   :  { %s32_s22 = sshll.u32 %s462_s21, 4  ;;  %s17_s25 = sshll.u32 %s518_s0, 4  ;;  %s33_s22 = int_to_ptr.vmem [resolvable:$true] %s32_s22  ;;  %s18_s25 = int_to_ptr.hbm [resolvable:$true] %s17_s25 }
   0x4   :  { %s463_s26 = smov 64   ;;  %s464_s27 = smov 4  }
   0x5   :  { %38 = dma.hbm_to_vmem [thread:$0]  %s31_s20, 1024, %s33_s22, [#allocation6], %s463_s26, %s463_s26, %s464_s27  }
   0x6   :  { %s465_s28 = smov [#allocation2]   ;;  %s45_s7 = sshll.u32 %s521_s3, 4  ;;  %s46_s7 = int_to_ptr.hbm [resolvable:$true] %s45_s7 }
   0x7   :  { %s19_s29 = sshll.u32 %s465_s28, 4  ;;  %s466_s1 = smov [#allocation7]   ;;  %s20_s29 = int_to_ptr.vmem [resolvable:$true] %s19_s29 }
   0x8   :  { %25 = dma.hbm_to_vmem [thread:$0]  %s18_s25, 128, %s20_s29, [#allocation3], %s463_s26, %s463_s26, %s464_s27  }
   0x9   :  { %s47_s8 = sshll.u32 %s466_s1, 4  ;;  %s48_s8 = int_to_ptr.vmem [resolvable:$true] %s47_s8 }
   0xa   :  { %53 = dma.hbm_to_vmem [thread:$0]  %s46_s7, 1024, %s48_s8, [#allocation6], %s463_s26, %s463_s26, %s464_s27  }
   0xb   :  { %456 = dma.done.wait [#allocation3], 128  }
   0xc   :  { %457 = vsyncadd [#allocation3], 4294967168 }
   0xd   :  { %458 = dma.done.wait [#allocation6], 2048  }
   0xe   :  { %459 = vsyncadd [#allocation6], 4294965248  ;;  %v341_v0 = vld [vmem:[#allocation5 + $0x38] sm:$0xff]  ;;  %v340_v1 = vld [vmem:[#allocation5 + $0x30] sm:$0xff]  ;;  %s467_s11 = smov [#allocation8]   ;;  %s468_s15 = smov 128  }
   0xf   :  { %144 = vmatpush.bf16.msra.mxu0 %v341_v0  ;;  %v349_v2 = vld [vmem:[#allocation7 + $0x38] sm:$0xff]  ;;  %v348_v3 = vld [vmem:[#allocation7 + $0x30] sm:$0xff]  ;;  %v339_v4 = vld [vmem:[#allocation5 + $0x28] sm:$0xff]  ;;  %s249_s12 = sshll.u32 %s467_s11, 4  ;;  %s469_s16 = smov 8   ;;  %s250_s12 = int_to_ptr.vmem [resolvable:$true] %s249_s12 }
  0x10   :  { %229 = vmatpush.bf16.msra.mxu1 %v349_v2  ;;  %v347_v5 = vld [vmem:[#allocation7 + $0x28] sm:$0xff]  ;;  %v338_v6 = vld [vmem:[#allocation5 + $0x20] sm:$0xff]  ;;  %v337_v8 = vld [vmem:[#allocation5 + $0x18] sm:$0xff] }
  0x11   :  { %v346_v7 = vld [vmem:[#allocation7 + $0x20] sm:$0xff]  ;;  %v336_v9 = vld [vmem:[#allocation5 + $0x10] sm:$0xff]  ;;  %v335_v10 = vld [vmem:[#allocation5 + $0x8] sm:$0xff] }
  0x12   :  { %v334_v11 = vld [vmem:[#allocation5] sm:$0xff]  ;;  %v333_v12 = vld [vmem:[#allocation2] sm:$0xff]  ;;  %v344_v14 = vld [vmem:[#allocation7 + $0x10] sm:$0xff] }
  0x13   :  { %145 = vmatpush.bf16.msra.mxu0 %v340_v1  ;;  %v345_v13 = vld [vmem:[#allocation7 + $0x18] sm:$0xff]  ;;  %v343_v15 = vld [vmem:[#allocation7 + $0x8] sm:$0xff]  ;;  %v342_v16 = vld [vmem:[#allocation7] sm:$0xff] }
  0x14   :  { %230 = vmatpush.bf16.msra.mxu1 %v348_v3  ;;  %v358_v18 = vld [vmem:[%s520_s2] ss:$0 sm:$0xff]  ;;  %s251_s2 = sshll.u32 %s523_s5, 4  ;;  %s252_s2 = int_to_ptr.hbm [resolvable:$true] %s251_s2 }
  0x15   :  { %v359_v25 = vld [vmem:[%s522_s4] ss:$0 sm:$0xff] }
  0x17   :  { %146 = vmatpush.bf16.msra.mxu0 %v339_v4 }
  0x18   :  { %231 = vmatpush.bf16.msra.mxu1 %v347_v5 }
  0x1b   :  { %147 = vmatpush.bf16.msra.mxu0 %v338_v6 }
  0x1c   :  { %232 = vmatpush.bf16.msra.mxu1 %v346_v7 }
  0x1f   :  { %148 = vmatpush.bf16.msra.mxu0 %v337_v8 }
  0x20   :  { %233 = vmatpush.bf16.msra.mxu1 %v345_v13 }
  0x23   :  { %149 = vmatpush.bf16.msra.mxu0 %v336_v9 }
  0x24   :  { %234 = vmatpush.bf16.msra.mxu1 %v344_v14 }
  0x27   :  { %150 = vmatpush.bf16.msra.mxu0 %v335_v10 }
  0x28   :  { %235 = vmatpush.bf16.msra.mxu1 %v343_v15 }
  0x2b   :  { %151 = vmatpush.bf16.msra.mxu0 %v334_v11 }
  0x2c   :  { %236 = vmatpush.bf16.msra.mxu1 %v342_v16 }
  0x2e   :  { %152 = vmatmul.bf16.vlgmr.msra.gmra.mxu0 %v333_v12 }
  0xab   :  { %v153_v17 = vpop.f32.mrf.mxu0 }
  0xac   :  { %v154_v19 = vadd.f32 %v358_v18, %v153_v17 }
  0xae   :  { %v158_v22 = vmax.f32 %v154_v19, 0.0 }
  0xb3   :  { %v155_v20 = vpop.f32.mrf.mxu0 }
  0xb4   :  { %v156_v21 = vadd.f32 %v358_v18, %v155_v20 }
  0xb6   :  { %v159_v23 = vmax.f32 %v156_v21, 0.0 }
  0xb8   :  { %v160_v24 = vpack.c.bf16 %v159_v23, %v158_v22 }
  0xba   :  { %237 = vmatmul.bf16.vlgmr.msra.gmra.mxu1 %v160_v24 }
 0x137   :  { %v238_v26 = vpop.f32.mrf.mxu1 }
 0x138   :  { %v239_v27 = vadd.f32 %v359_v25, %v238_v26 }
 0x13a   :  { %243 = vst [vmem:[#allocation8] sm:$0xff] %v239_v27 }
 0x13f   :  { %v240_v28 = vpop.f32.mrf.mxu1 }
 0x140   :  { %v241_v29 = vadd.f32 %v359_v25, %v240_v28 }
 0x142   :  { %244 = vst [vmem:[#allocation8 + $0x8] sm:$0xff] %v241_v29 }
 0x143   :  { %257 = dma.vmem_to_hbm [thread:$0]  %s250_s12, 256, %s252_s2, [#allocation4], %s468_s15, %s468_s15, %s469_s16  }
 0x144   :  { %460 = dma.done.wait [#allocation4], 256  }
 0x145   :  { %461 = vsyncadd [#allocation4], 4294967040 }
 0x146   :  { %262 = vsyncpa [#allocation3], 1 }
 0x147   :  { %263 = vsyncpa [#allocation6], 1 }
 0x148   :  { %264 = vsyncpa [#allocation4], 1 }

</bundles_post_ra>
